<compile_context>
chip_gen: v7x
topology: tpu7x:2x2x1
jax: 0.10.0
libtpu: 0.0.40
codegen_flags: <defaults>
</compile_context>

<pallas_src>
import jax
import jax.numpy as jnp
from jax import lax
from jax.experimental import pallas as pl
from jax.experimental.pallas import tpu as pltpu


def _round_up(x, m):
    return (x + m - 1) // m * m


# --------------------------------------------------------------------------
# Fused Gram kernel: accumulate the four K x K Gram matrices over the N axis.
# Inputs are (K, tile_n) lane-dense tiles; outputs are per-core-split
# unnormalized partial Grams (normalization / core-sum done in the wrapper).
# --------------------------------------------------------------------------
def _gram4_kernel(phi_ref, tphi_ref, phi1_ref,
                  g11_ref, gpt_ref, gpp_ref, gtt_ref):
    i = pl.program_id(1)          # reduction step along N (axis 1, "arbitrary")

    @pl.when(i == 0)
    def _():
        g11_ref[...] = jnp.zeros_like(g11_ref)
        gpt_ref[...] = jnp.zeros_like(gpt_ref)
        gpp_ref[...] = jnp.zeros_like(gpp_ref)
        gtt_ref[...] = jnp.zeros_like(gtt_ref)

    # Contract over the lane (N) axis of both operands: (K, T) x (K, T) -> (K, K)
    dn = (((1,), (1,)), ((), ()))
    p = phi_ref[...]
    t = tphi_ref[...]
    p1 = phi1_ref[...]
    g11_ref[...] += lax.dot_general(p1, p1, dn, preferred_element_type=jnp.float32)
    gpt_ref[...] += lax.dot_general(p, t, dn, preferred_element_type=jnp.float32)
    gpp_ref[...] += lax.dot_general(p, p, dn, preferred_element_type=jnp.float32)
    gtt_ref[...] += lax.dot_general(t, t, dn, preferred_element_type=jnp.float32)


def gram_matrices(phi, tphi, phi1, *, max_tile_n=8192, num_core_splits=None,
                  compute_dtype=None):
    """Returns (sigma, pi, Gpp, Gtt), each (K, K) and already divided by N."""
    n, k = phi.shape

    if num_core_splits is None:
        # Tiny problems: one core, one grid step. Big problems: split the N
        # reduction across the two v7x TensorCores (harmless on 1-TC chips).
        num_core_splits = 1 if n <= 1024 else 2

    # Lane-dense layout: (K, N).
    xs = [phi.T, tphi.T, phi1.T]
    if compute_dtype is not None:
        # Opt-in bandwidth saver (e.g. bf16 streaming); accumulation stays f32.
        xs = [x.astype(compute_dtype) for x in xs]

    # Pick a large N tile, then shrink it so zero-padding is minimal.
    tile_n = min(_round_up(pl.cdiv(n, num_core_splits), 128), max_tile_n)
    total_tiles = _round_up(pl.cdiv(n, tile_n), num_core_splits)
    tile_n = _round_up(pl.cdiv(n, total_tiles), 128)
    n_padded = tile_n * total_tiles
    tiles_per_split = total_tiles // num_core_splits

    if n_padded != n:
        # Zero rows contribute nothing to X^T X; we still divide by the true N.
        xs = [jnp.pad(x, ((0, 0), (0, n_padded - n))) for x in xs]

    grid = (num_core_splits, tiles_per_split)

    in_spec = pl.BlockSpec((k, tile_n),
                           lambda c, i: (0, c * tiles_per_split + i))
    out_spec = pl.BlockSpec((None, k, k), lambda c, i: (c, 0, 0))
    out_shape = jax.ShapeDtypeStruct((num_core_splits, k, k), jnp.float32)

    g11, gpt, gpp, gtt = pl.pallas_call(
        _gram4_kernel,
        out_shape=(out_shape, out_shape, out_shape, out_shape),
        grid_spec=pltpu.PrefetchScalarGridSpec(
            num_scalar_prefetch=0,
            grid=grid,
            in_specs=[in_spec, in_spec, in_spec],
            out_specs=[out_spec, out_spec, out_spec, out_spec],
        ),
        compiler_params=pltpu.CompilerParams(
            dimension_semantics=("parallel", "arbitrary")),
    )(*xs)

    inv_n = jnp.float32(1.0 / n)
    sigma = jnp.sum(g11, axis=0) * inv_n
    pi = jnp.sum(gpt, axis=0) * inv_n
    gpp_n = jnp.sum(gpp, axis=0) * inv_n
    gtt_n = jnp.sum(gtt, axis=0) * inv_n
    return sigma, pi, gpp_n, gtt_n


# --------------------------------------------------------------------------
# spin_step: tiny K x K linear algebra (standard SpIN formulation).
#   chol     = cholesky(sigma)      (lower triangular L, L L^T = sigma)
#   chol_inv = L^{-1}
#   Lambda   = L^{-1} pi L^{-T}
#   eigvals  = diag(Lambda)
# K = neigs is tiny -> plain JAX glue, not a Pallas hot path.
# --------------------------------------------------------------------------
def spin_step(sigma, pi):
    k = sigma.shape[0]
    chol = jnp.linalg.cholesky(sigma)
    chol_inv = jax.scipy.linalg.solve_triangular(
        chol, jnp.eye(k, dtype=sigma.dtype), lower=True)
    lam = chol_inv @ pi @ chol_inv.T
    eigvals = jnp.diag(lam)
    return chol, chol_inv, lam, eigvals


# --------------------------------------------------------------------------
# Full forward of SpINxLossFunction.
# --------------------------------------------------------------------------
def spinx_loss_forward(phi, tphi, phi1, trace_weights, *, max_tile_n=8192,
                       num_core_splits=None, compute_dtype=None):
    sigma, pi, gpp, gtt = gram_matrices(
        phi, tphi, phi1, max_tile_n=max_tile_n,
        num_core_splits=num_core_splits, compute_dtype=compute_dtype)

    chol, chol_inv, lam, eigvals = spin_step(sigma, pi)
    loss_trace = jnp.sum(trace_weights * eigvals)

    # residuals = Tphi @ A^T - phi @ A^T @ diag(eig), A = chol_inv
    # loss_j    = mean_n residuals[n, j]^2, recovered from the Gram matrices:
    #   loss_j = [A Gtt A^T]_jj - 2 eig_j [A pi A^T]_jj + eig_j^2 [A Gpp A^T]_jj
    a = chol_inv
    d_tt = jnp.einsum('jk,kl,jl->j', a, gtt, a)
    d_pt = jnp.einsum('jk,kl,jl->j', a, pi, a)    # == eigvals by construction
    d_pp = jnp.einsum('jk,kl,jl->j', a, gpp, a)
    loss_residuals = d_tt - 2.0 * eigvals * d_pt + eigvals * eigvals * d_pp

    losses = jnp.concatenate([loss_trace[None], loss_residuals])
    return losses, sigma


# Pure-JAX reference (direct residual computation) for sanity checking.
def spinx_loss_reference(phi, tphi, phi1, trace_weights):
    n = phi.shape[0]
    sigma = phi1.T @ phi1 / n
    pi = phi.T @ tphi / n
    chol, chol_inv, lam, eigvals = spin_step(sigma, pi)
    loss_trace = jnp.sum(trace_weights * eigvals)
    residuals = tphi @ chol_inv.T - phi @ chol_inv.T @ jnp.diag(eigvals)
    loss_residuals = jnp.mean(residuals ** 2, axis=0)
    losses = jnp.concatenate([loss_trace[None], loss_residuals])
    return losses, sigma


if __name__ == "__main__":
    neigs = 8
    n_samples = 256

    # Deterministic parameter init (module __init__: trace_weights = ones(neigs)).
    trace_weights = jnp.ones((neigs,), dtype=jnp.float32)

    key = jax.random.PRNGKey(0)
    k1, k2, k3 = jax.random.split(key, 3)
    phi = jax.random.normal(k1, (n_samples, neigs), dtype=jnp.float32)
    tphi = jax.random.normal(k2, (n_samples, neigs), dtype=jnp.float32)
    phi1 = jax.random.normal(k3, (n_samples, neigs), dtype=jnp.float32)

    losses, sigma = spinx_loss_forward(phi, tphi, phi1, trace_weights)
    jax.block_until_ready((losses, sigma))

    # Also exercise the explicit 2-way core split path (v7x-style) for coverage.
    losses2, sigma2 = spinx_loss_forward(phi, tphi, phi1, trace_weights,
                                         num_core_splits=2, max_tile_n=128)
    jax.block_until_ready((losses2, sigma2))

    ref_losses, ref_sigma = spinx_loss_reference(phi, tphi, phi1, trace_weights)
    assert jnp.allclose(losses, ref_losses, rtol=1e-4, atol=1e-4)
    assert jnp.allclose(sigma, ref_sigma, rtol=1e-4, atol=1e-4)
    assert jnp.allclose(losses2, ref_losses, rtol=1e-4, atol=1e-4)
    assert jnp.allclose(sigma2, ref_sigma, rtol=1e-4, atol=1e-4)

    print("KERNEL_OK")
</pallas_src>

<mosaic_0001>
module attributes {stable_mosaic.version = 11 : i64} {
  func.func @_gram4_kernel(%arg0: i32, %arg1: i32, %arg2: memref<8x256xf32, #tpu.memory_space<vmem>>, %arg3: memref<8x256xf32, #tpu.memory_space<vmem>>, %arg4: memref<8x256xf32, #tpu.memory_space<vmem>>, %arg5: memref<1x8x8xf32, #tpu.memory_space<vmem>>, %arg6: memref<1x8x8xf32, #tpu.memory_space<vmem>>, %arg7: memref<1x8x8xf32, #tpu.memory_space<vmem>>, %arg8: memref<1x8x8xf32, #tpu.memory_space<vmem>>) attributes {dimension_semantics = [#tpu.dimension_semantics<parallel>, #tpu.dimension_semantics<arbitrary>], iteration_bounds = array<i64: 1, 1>, scalar_prefetch = 0 : i64, scratch_operands = 0 : i64, tpu.core_type = #tpu.core_type<tc>, window_params = [{transform_indices = @transform_0, window_bounds = array<i64: 8, 256>}, {transform_indices = @transform_1, window_bounds = array<i64: 8, 256>}, {transform_indices = @transform_2, window_bounds = array<i64: 8, 256>}, {transform_indices = @transform_3, window_bounds = array<i64: 1, 8, 8>}, {transform_indices = @transform_4, window_bounds = array<i64: 1, 8, 8>}, {transform_indices = @transform_5, window_bounds = array<i64: 1, 8, 8>}, {transform_indices = @transform_6, window_bounds = array<i64: 1, 8, 8>}]} {
    %c0_i32 = arith.constant 0 : i32
    %0 = arith.cmpi eq, %arg1, %c0_i32 : i32
    %1 = arith.extui %0 : i1 to i32
    %c0_i32_0 = arith.constant 0 : i32
    %2 = arith.cmpi ne, %1, %c0_i32_0 : i32
    scf.if %2 {
      %cst_33 = arith.constant 0.000000e+00 : f32
      %34 = vector.broadcast %cst_33 : f32 to vector<8x8xf32>
      %c0_34 = arith.constant 0 : index
      %c0_35 = arith.constant 0 : index
      %c0_36 = arith.constant 0 : index
      %35 = vector.load %arg5[%c0_34, %c0_35, %c0_36] : memref<1x8x8xf32, #tpu.memory_space<vmem>>, vector<1x8x8xf32>
      %36 = vector.shape_cast %35 : vector<1x8x8xf32> to vector<8x8xf32>
      %37 = vector.shape_cast %34 : vector<8x8xf32> to vector<1x8x8xf32>
      tpu.vector_store %arg5[%c0_34, %c0_35, %c0_36], %37 {strides = array<i32>} : memref<1x8x8xf32, #tpu.memory_space<vmem>>, vector<1x8x8xf32>,
      %cst_37 = arith.constant 0.000000e+00 : f32
      %38 = vector.broadcast %cst_37 : f32 to vector<8x8xf32>
      %c0_38 = arith.constant 0 : index
      %c0_39 = arith.constant 0 : index
      %c0_40 = arith.constant 0 : index
      %39 = vector.load %arg6[%c0_38, %c0_39, %c0_40] : memref<1x8x8xf32, #tpu.memory_space<vmem>>, vector<1x8x8xf32>
      %40 = vector.shape_cast %39 : vector<1x8x8xf32> to vector<8x8xf32>
      %41 = vector.shape_cast %38 : vector<8x8xf32> to vector<1x8x8xf32>
      tpu.vector_store %arg6[%c0_38, %c0_39, %c0_40], %41 {strides = array<i32>} : memref<1x8x8xf32, #tpu.memory_space<vmem>>, vector<1x8x8xf32>,
      %cst_41 = arith.constant 0.000000e+00 : f32
      %42 = vector.broadcast %cst_41 : f32 to vector<8x8xf32>
      %c0_42 = arith.constant 0 : index
      %c0_43 = arith.constant 0 : index
      %c0_44 = arith.constant 0 : index
      %43 = vector.load %arg7[%c0_42, %c0_43, %c0_44] : memref<1x8x8xf32, #tpu.memory_space<vmem>>, vector<1x8x8xf32>
      %44 = vector.shape_cast %43 : vector<1x8x8xf32> to vector<8x8xf32>
      %45 = vector.shape_cast %42 : vector<8x8xf32> to vector<1x8x8xf32>
      tpu.vector_store %arg7[%c0_42, %c0_43, %c0_44], %45 {strides = array<i32>} : memref<1x8x8xf32, #tpu.memory_space<vmem>>, vector<1x8x8xf32>,
      %cst_45 = arith.constant 0.000000e+00 : f32
      %46 = vector.broadcast %cst_45 : f32 to vector<8x8xf32>
      %c0_46 = arith.constant 0 : index
      %c0_47 = arith.constant 0 : index
      %c0_48 = arith.constant 0 : index
      %47 = vector.load %arg8[%c0_46, %c0_47, %c0_48] : memref<1x8x8xf32, #tpu.memory_space<vmem>>, vector<1x8x8xf32>
      %48 = vector.shape_cast %47 : vector<1x8x8xf32> to vector<8x8xf32>
      %49 = vector.shape_cast %46 : vector<8x8xf32> to vector<1x8x8xf32>
      tpu.vector_store %arg8[%c0_46, %c0_47, %c0_48], %49 {strides = array<i32>} : memref<1x8x8xf32, #tpu.memory_space<vmem>>, vector<1x8x8xf32>,
    } else {
    }
    %c0 = arith.constant 0 : index
    %c0_1 = arith.constant 0 : index
    %3 = vector.load %arg2[%c0, %c0_1] : memref<8x256xf32, #tpu.memory_space<vmem>>, vector<8x256xf32>
    %c0_2 = arith.constant 0 : index
    %c0_3 = arith.constant 0 : index
    %4 = vector.load %arg3[%c0_2, %c0_3] : memref<8x256xf32, #tpu.memory_space<vmem>>, vector<8x256xf32>
    %c0_4 = arith.constant 0 : index
    %c0_5 = arith.constant 0 : index
    %5 = vector.load %arg4[%c0_4, %c0_5] : memref<8x256xf32, #tpu.memory_space<vmem>>, vector<8x256xf32>
    %c0_6 = arith.constant 0 : index
    %c0_7 = arith.constant 0 : index
    %c0_8 = arith.constant 0 : index
    %6 = vector.load %arg5[%c0_6, %c0_7, %c0_8] : memref<1x8x8xf32, #tpu.memory_space<vmem>>, vector<1x8x8xf32>
    %7 = vector.shape_cast %6 : vector<1x8x8xf32> to vector<8x8xf32>
    %cst = arith.constant dense<0.000000e+00> : vector<8x8xf32>
    %8 = tpu.matmul %5, %5, %cst {dimension_numbers = #tpu.dot_dimension_numbers<[1], [1], [0], [0], [0, 0, 1, 0], [], []>} : vector<8x256xf32>, vector<8x256xf32>, vector<8x8xf32> -> vector<8x8xf32>
    %9 = arith.addf %7, %8 : vector<8x8xf32>
    %c0_9 = arith.constant 0 : index
    %c0_10 = arith.constant 0 : index
    %c0_11 = arith.constant 0 : index
    %10 = vector.load %arg5[%c0_9, %c0_10, %c0_11] : memref<1x8x8xf32, #tpu.memory_space<vmem>>, vector<1x8x8xf32>
    %11 = vector.shape_cast %10 : vector<1x8x8xf32> to vector<8x8xf32>
    %12 = vector.shape_cast %9 : vector<8x8xf32> to vector<1x8x8xf32>
    tpu.vector_store %arg5[%c0_9, %c0_10, %c0_11], %12 {strides = array<i32>} : memref<1x8x8xf32, #tpu.memory_space<vmem>>, vector<1x8x8xf32>,
    %c0_12 = arith.constant 0 : index
    %c0_13 = arith.constant 0 : index
    %c0_14 = arith.constant 0 : index
    %13 = vector.load %arg6[%c0_12, %c0_13, %c0_14] : memref<1x8x8xf32, #tpu.memory_space<vmem>>, vector<1x8x8xf32>
    %14 = vector.shape_cast %13 : vector<1x8x8xf32> to vector<8x8xf32>
    %cst_15 = arith.constant dense<0.000000e+00> : vector<8x8xf32>
    %15 = tpu.matmul %3, %4, %cst_15 {dimension_numbers = #tpu.dot_dimension_numbers<[1], [1], [0], [0], [0, 0, 1, 0], [], []>} : vector<8x256xf32>, vector<8x256xf32>, vector<8x8xf32> -> vector<8x8xf32>
    %16 = arith.addf %14, %15 : vector<8x8xf32>
    %c0_16 = arith.constant 0 : index
    %c0_17 = arith.constant 0 : index
    %c0_18 = arith.constant 0 : index
    %17 = vector.load %arg6[%c0_16, %c0_17, %c0_18] : memref<1x8x8xf32, #tpu.memory_space<vmem>>, vector<1x8x8xf32>
    %18 = vector.shape_cast %17 : vector<1x8x8xf32> to vector<8x8xf32>
    %19 = vector.shape_cast %16 : vector<8x8xf32> to vector<1x8x8xf32>
    tpu.vector_store %arg6[%c0_16, %c0_17, %c0_18], %19 {strides = array<i32>} : memref<1x8x8xf32, #tpu.memory_space<vmem>>, vector<1x8x8xf32>,
    %c0_19 = arith.constant 0 : index
    %c0_20 = arith.constant 0 : index
    %c0_21 = arith.constant 0 : index
    %20 = vector.load %arg7[%c0_19, %c0_20, %c0_21] : memref<1x8x8xf32, #tpu.memory_space<vmem>>, vector<1x8x8xf32>
    %21 = vector.shape_cast %20 : vector<1x8x8xf32> to vector<8x8xf32>
    %cst_22 = arith.constant dense<0.000000e+00> : vector<8x8xf32>
    %22 = tpu.matmul %3, %3, %cst_22 {dimension_numbers = #tpu.dot_dimension_numbers<[1], [1], [0], [0], [0, 0, 1, 0], [], []>} : vector<8x256xf32>, vector<8x256xf32>, vector<8x8xf32> -> vector<8x8xf32>
    %23 = arith.addf %21, %22 : vector<8x8xf32>
    %c0_23 = arith.constant 0 : index
    %c0_24 = arith.constant 0 : index
    %c0_25 = arith.constant 0 : index
    %24 = vector.load %arg7[%c0_23, %c0_24, %c0_25] : memref<1x8x8xf32, #tpu.memory_space<vmem>>, vector<1x8x8xf32>
    %25 = vector.shape_cast %24 : vector<1x8x8xf32> to vector<8x8xf32>
    %26 = vector.shape_cast %23 : vector<8x8xf32> to vector<1x8x8xf32>
    tpu.vector_store %arg7[%c0_23, %c0_24, %c0_25], %26 {strides = array<i32>} : memref<1x8x8xf32, #tpu.memory_space<vmem>>, vector<1x8x8xf32>,
    %c0_26 = arith.constant 0 : index
    %c0_27 = arith.constant 0 : index
    %c0_28 = arith.constant 0 : index
    %27 = vector.load %arg8[%c0_26, %c0_27, %c0_28] : memref<1x8x8xf32, #tpu.memory_space<vmem>>, vector<1x8x8xf32>
    %28 = vector.shape_cast %27 : vector<1x8x8xf32> to vector<8x8xf32>
    %cst_29 = arith.constant dense<0.000000e+00> : vector<8x8xf32>
    %29 = tpu.matmul %4, %4, %cst_29 {dimension_numbers = #tpu.dot_dimension_numbers<[1], [1], [0], [0], [0, 0, 1, 0], [], []>} : vector<8x256xf32>, vector<8x256xf32>, vector<8x8xf32> -> vector<8x8xf32>
    %30 = arith.addf %28, %29 : vector<8x8xf32>
    %c0_30 = arith.constant 0 : index
    %c0_31 = arith.constant 0 : index
    %c0_32 = arith.constant 0 : index
    %31 = vector.load %arg8[%c0_30, %c0_31, %c0_32] : memref<1x8x8xf32, #tpu.memory_space<vmem>>, vector<1x8x8xf32>
    %32 = vector.shape_cast %31 : vector<1x8x8xf32> to vector<8x8xf32>
    %33 = vector.shape_cast %30 : vector<8x8xf32> to vector<1x8x8xf32>
    tpu.vector_store %arg8[%c0_30, %c0_31, %c0_32], %33 {strides = array<i32>} : memref<1x8x8xf32, #tpu.memory_space<vmem>>, vector<1x8x8xf32>,
    return
  }
  func.func @transform_0(%arg0: i32, %arg1: i32) -> (i32, i32) {
    %c1_i32 = arith.constant 1 : i32
    %0 = arith.muli %arg0, %c1_i32 : i32
    %1 = arith.addi %0, %arg1 : i32
    %c0_i32 = arith.constant 0 : i32
    %c0_i32_0 = arith.constant 0 : i32
    return %c0_i32, %1 : i32, i32
  }
  func.func @transform_1(%arg0: i32, %arg1: i32) -> (i32, i32) {
    %c1_i32 = arith.constant 1 : i32
    %0 = arith.muli %arg0, %c1_i32 : i32
    %1 = arith.addi %0, %arg1 : i32
    %c0_i32 = arith.constant 0 : i32
    %c0_i32_0 = arith.constant 0 : i32
    return %c0_i32, %1 : i32, i32
  }
  func.func @transform_2(%arg0: i32, %arg1: i32) -> (i32, i32) {
    %c1_i32 = arith.constant 1 : i32
    %0 = arith.muli %arg0, %c1_i32 : i32
    %1 = arith.addi %0, %arg1 : i32
    %c0_i32 = arith.constant 0 : i32
    %c0_i32_0 = arith.constant 0 : i32
    return %c0_i32, %1 : i32, i32
  }
  func.func @transform_3(%arg0: i32, %arg1: i32) -> (i32, i32, i32) {
    %c0_i32 = arith.constant 0 : i32
    %c0_i32_0 = arith.constant 0 : i32
    %c0_i32_1 = arith.constant 0 : i32
    return %arg0, %c0_i32, %c0_i32_0 : i32, i32, i32
  }
  func.func @transform_4(%arg0: i32, %arg1: i32) -> (i32, i32, i32) {
    %c0_i32 = arith.constant 0 : i32
    %c0_i32_0 = arith.constant 0 : i32
    %c0_i32_1 = arith.constant 0 : i32
    return %arg0, %c0_i32, %c0_i32_0 : i32, i32, i32
  }
  func.func @transform_5(%arg0: i32, %arg1: i32) -> (i32, i32, i32) {
    %c0_i32 = arith.constant 0 : i32
    %c0_i32_0 = arith.constant 0 : i32
    %c0_i32_1 = arith.constant 0 : i32
    return %arg0, %c0_i32, %c0_i32_0 : i32, i32, i32
  }
  func.func @transform_6(%arg0: i32, %arg1: i32) -> (i32, i32, i32) {
    %c0_i32 = arith.constant 0 : i32
    %c0_i32_0 = arith.constant 0 : i32
    %c0_i32_1 = arith.constant 0 : i32
    return %arg0, %c0_i32, %c0_i32_0 : i32, i32, i32
  }
}

</mosaic_0001>

<bundles_post_ra>
// kernel: tpu_custom_call.1
= control target key start
LH: loop header
LB: loop body
LE: loop exit
PB: predicated region body
PF: predicated region fallthrough
CT: control target
= control target key end

     0   :  { %12 = vsyncpa [#allocation3], 0  ;;  %s763_s0 = inlined_call_operand.hbm [shape: f32[8,256], index: 0, kind: input, shape index: {}]   ;;  %s764_s1 = inlined_call_operand.hbm [shape: f32[8,256], index: 1, kind: input, shape index: {}]   ;;  %s765_s2 = inlined_call_operand.hbm [shape: f32[8,256], index: 2, kind: input, shape index: {}]   ;;  %s766_s3 = inlined_call_operand.hbm [shape: f32[1,8,8], index: 3, kind: output, shape index: {0}]   ;;  %s767_s4 = inlined_call_operand.hbm [shape: f32[1,8,8], index: 4, kind: output, shape index: {1}]   ;;  %s768_s5 = inlined_call_operand.hbm [shape: f32[1,8,8], index: 5, kind: output, shape index: {2}]   ;;  %s769_s6 = inlined_call_operand.hbm [shape: f32[1,8,8], index: 6, kind: output, shape index: {3}]  }
   0x1   :  { %13 = vsyncpa [#allocation6], 0 }
   0x2   :  { %14 = vsyncpa [#allocation4], 0 }
   0x3   :  { %15 = vsyncpa [#allocation10], 0 }
   0x4   :  { %16 = vsyncpa [#allocation13], 0  ;;  %s611_s21 = smov [#allocation5]   ;;  %s612_s23 = smov [#allocation2]  }
   0x5   :  { %s41_s22 = sshll.u32 %s611_s21, 4  ;;  %s27_s24 = sshll.u32 %s612_s23, 4  ;;  %s42_s22 = int_to_ptr.vmem [resolvable:$true] %s41_s22  ;;  %s28_s24 = int_to_ptr.vmem [resolvable:$true] %s27_s24 }
   0x6   :  { %s447_s27 = scalar_lea.hbm %s764_s1, 256 }
   0x7   :  { %p448_p0 = scmp.ne.s32.totalorder %s764_s1, %s447_s27  ;;  %p451_p1 = scmp.lt.u32.totalorder %s447_s27, %s764_s1 }
   0x9   :  { %p453_p2 = pnand %p451_p1, %p448_p0 }
   0xb   :  { %456 = shalt.err (!%p453_p2)
}
   0xc   :  { %s457_s8 = scalar_lea.vmem %s42_s22, 256  ;;  %p462_p4 = scmp.lt.s32.totalorder %s42_s22, %s42_s22 }
   0xd   :  { %p458_p3 = scmp.ne.s32.totalorder %s42_s22, %s457_s8  ;;  %p463_p5 = scmp.lt.s32.totalorder %s457_s8, %s457_s8 }
   0xf   :  { %p464_p6 = por %p463_p5, %p462_p4 }
  0x11   :  { %p465_p7 = pnand %p464_p6, %p458_p3 }
  0x13   :  { %468 = shalt.err (!%p465_p7)
}
  0x14   :  { %44 = dma.hbm_to_vmem [thread:$0]  %s764_s1, 256, %s42_s22, [#allocation6]  }
  0x15   :  { %s469_s13 = scalar_lea.hbm %s763_s0, 256 }
  0x16   :  { %p470_p8 = scmp.ne.s32.totalorder %s763_s0, %s469_s13  ;;  %p473_p9 = scmp.lt.u32.totalorder %s469_s13, %s763_s0 }
  0x18   :  { %p475_p10 = pnand %p473_p9, %p470_p8 }
  0x1a   :  { %478 = shalt.err (!%p475_p10)
}
  0x1b   :  { %s479_s18 = scalar_lea.vmem %s28_s24, 256  ;;  %p484_p12 = scmp.lt.s32.totalorder %s28_s24, %s28_s24 }
  0x1c   :  { %p480_p11 = scmp.ne.s32.totalorder %s28_s24, %s479_s18  ;;  %p485_p13 = scmp.lt.s32.totalorder %s479_s18, %s479_s18 }
  0x1e   :  { %p486_p0 = por %p485_p13, %p484_p12 }
  0x20   :  { %p487_p1 = pnand %p486_p0, %p480_p11 }
  0x22   :  { %490 = shalt.err (!%p487_p1)
}
  0x23   :  { %30 = dma.hbm_to_vmem [thread:$0]  %s763_s0, 256, %s28_s24, [#allocation3]  }
  0x24   :  { %s613_s20 = smov [#allocation7]   ;;  %s491_s25 = scalar_lea.hbm %s765_s2, 256 }
  0x25   :  { %s55_s21 = sshll.u32 %s613_s20, 4  ;;  %p492_p2 = scmp.ne.s32.totalorder %s765_s2, %s491_s25  ;;  %s56_s21 = int_to_ptr.vmem [resolvable:$true] %s55_s21 }
  0x26   :  { %p495_p3 = scmp.lt.u32.totalorder %s491_s25, %s765_s2 }
  0x28   :  { %p497_p4 = pnand %p495_p3, %p492_p2 }
  0x2a   :  { %500 = shalt.err (!%p497_p4)
}
  0x2b   :  { %s501_s30 = scalar_lea.vmem %s56_s21, 256  ;;  %p506_p6 = scmp.lt.s32.totalorder %s56_s21, %s56_s21 }
  0x2c   :  { %p502_p5 = scmp.ne.s32.totalorder %s56_s21, %s501_s30  ;;  %p507_p7 = scmp.lt.s32.totalorder %s501_s30, %s501_s30 }
  0x2e   :  { %p508_p8 = por %p507_p7, %p506_p6 }
  0x30   :  { %p509_p9 = pnand %p508_p8, %p502_p5 }
  0x32   :  { %512 = shalt.err (!%p509_p9)
}
  0x33   :  { %58 = dma.hbm_to_vmem [thread:$0]  %s765_s2, 256, %s56_s21, [#allocation6]  }
  0x34   :  { %601 = dma.done.wait [#allocation3], 256  }
  0x35   :  { %602 = vsyncadd [#allocation3], 4294967040 }
  0x36   :  { %603 = dma.done.wait [#allocation6], 512  }
  0x37   :  { %604 = vsyncadd [#allocation6], 4294966784  ;;  %vm78_vm0 = vcmask 64512   ;;  %v614_v0 = vmov 0.0   ;;  %v88_v1 = vld [vmem:[#allocation7 + $0x8] sm:$0xff]  ;;  %v86_v2 = vld [vmem:[#allocation5 + $0x8] sm:$0xff] }
  0x38   :  { %79 = vst.msk [vmem:[#allocation8] sm:$0xff] %vm78_vm0, %v614_v0  ;;  %80 = vst.msk [vmem:[#allocation9] sm:$0xff] %vm78_vm0, %v614_v0  ;;  %v87_v3 = vld [vmem:[#allocation7] sm:$0xff]  ;;  %90 = vmatprep.subr.mxu0 %v88_v1  ;;  %164 = vmatprep.subr.mxu1 %v86_v2  ;;  %v85_v4 = vld [vmem:[#allocation5] sm:$0xff]  ;;  %s615_s2 = smov [#allocation9]   ;;  %s616_s8 = smov [#allocation8]  }
  0x39   :  { %81 = vst.msk [vmem:[#allocation11] sm:$0xff] %vm78_vm0, %v614_v0  ;;  %82 = vst.msk [vmem:[#allocation12] sm:$0xff] %vm78_vm0, %v614_v0  ;;  %v84_v5 = vld [vmem:[#allocation2 + $0x8] sm:$0xff]  ;;  %91 = vmatpush1.xpose.msra.mxu0 %v87_v3  ;;  %165 = vmatpush1.xpose.msra.mxu1 %v85_v4  ;;  %v83_v6 = vld [vmem:[#allocation2] sm:$0xff]  ;;  %s398_s7 = sshll.u32 %s615_s2, 4  ;;  %s388_s9 = sshll.u32 %s616_s8, 4  ;;  %s399_s7 = int_to_ptr.vmem [resolvable:$true] %s398_s7  ;;  %s694_s9 = int_to_ptr.vmem [resolvable:$true] %s388_s9 }
  0x3a   :  { %154 = vmatprep.mubr.f32.mxu0 %v88_v1  ;;  %228 = vmatprep.mubr.f32.mxu1 %v84_v5  ;;  %s617_s10 = smov [#allocation11]   ;;  %s618_s12 = smov [#allocation12]  }
  0x3b   :  { %237 = vmatprep.subr.mxu0 %v84_v5  ;;  %310 = vmatprep.subr.mxu1 %v86_v2  ;;  %s408_s11 = sshll.u32 %s617_s10, 4  ;;  %s700_s13 = sshll.u32 %s618_s12, 4  ;;  %s698_s11 = int_to_ptr.vmem [resolvable:$true] %s408_s11  ;;  %s419_s13 = int_to_ptr.vmem [resolvable:$true] %s700_s13 }
  0x3c   :  { %155 = vmatmul.mubr.f32.vlgmr.msra.gmra.mrb[0].mxu0 %v87_v3  ;;  %229 = vmatmul.mubr.f32.vlgmr.msra.gmra.mrb[0].mxu1 %v83_v6  ;;  %s513_s14 = scalar_lea.vmem %s399_s7, 128  ;;  %p518_p11 = scmp.lt.s32.totalorder %s399_s7, %s399_s7 }
  0x3d   :  { %238 = vmatpush1.xpose.msra.mxu0 %v83_v6  ;;  %311 = vmatpush1.xpose.msra.mxu1 %v85_v4  ;;  %p514_p10 = scmp.ne.s32.totalorder %s399_s7, %s513_s14  ;;  %p519_p12 = scmp.lt.s32.totalorder %s513_s14, %s513_s14 }
  0x3e   :  { %301 = vmatprep.mubr.f32.mxu0 %v84_v5  ;;  %374 = vmatprep.mubr.f32.mxu1 %v86_v2 }
  0x3f   :  { %v89_v7 = vld [vmem:[#allocation8] sm:$0xff]  ;;  %v163_v8 = vld [vmem:[#allocation9] sm:$0xff]  ;;  %p520_p13 = por %p519_p12, %p518_p11 }
  0x40   :  { %302 = vmatmul.mubr.f32.vlgmr.msra.gmra.mrb[2].mxu0 %v83_v6  ;;  %375 = vmatmul.mubr.f32.vlgmr.msra.gmra.mrb[2].mxu1 %v85_v4  ;;  %v236_v15 = vld [vmem:[#allocation11] sm:$0xff]  ;;  %v309_v16 = vld [vmem:[#allocation12] sm:$0xff] }
  0x41   :  { %p521_p0 = pnand %p520_p13, %p514_p10 }
 0x10f   :  { %v156_v9 = vpop.f32.mrb[0].mxu0  ;;  %v230_v10 = vpop.f32.mrb[0].mxu1 }
 0x110   :  { %v160_v11 = vadd.f32 %v156_v9, %v89_v7  ;;  %v234_v12 = vadd.f32 %v230_v10, %v163_v8  ;;  %v158_v13 = vpop.f32.mrb[1].mxu0  ;;  %v232_v14 = vpop.f32.mrb[1].mxu1 }
 0x112   :  { %162 = vst.msk [vmem:[#allocation8] sm:$0xff] %vm78_vm0, %v160_v11  ;;  %235 = vst.msk [vmem:[#allocation9] sm:$0xff] %vm78_vm0, %v234_v12 }
 0x113   :  { %v303_v17 = vpop.f32.mrb[2].mxu0  ;;  %v376_v18 = vpop.f32.mrb[2].mxu1 }
 0x114   :  { %524 = shalt.err (!%p521_p0)
}
 0x115   :  { %s525_s17 = scalar_lea.hbm %s767_s4, 128 }
 0x116   :  { %p526_p1 = scmp.ne.s32.totalorder %s767_s4, %s525_s17  ;;  %p529_p2 = scmp.lt.u32.totalorder %s525_s17, %s767_s4 }
 0x118   :  { %p531_p3 = pnand %p529_p2, %p526_p1 }
 0x11a   :  { %534 = shalt.err (!%p531_p3)
}
 0x11b   :  { %401 = dma.vmem_to_hbm [thread:$0]  %s399_s7, 128, %s767_s4, [#allocation10]   ;;  %v307_v19 = vadd.f32 %v303_v17, %v236_v15  ;;  %v380_v20 = vadd.f32 %v376_v18, %v309_v16  ;;  %v305_v21 = vpop.f32.mrb[3].mxu0  ;;  %v378_v22 = vpop.f32.mrb[3].mxu1 }
 0x11c   :  { %s535_s23 = scalar_lea.vmem %s694_s9, 128  ;;  %p540_p5 = scmp.lt.s32.totalorder %s694_s9, %s694_s9 }
 0x11d   :  { %p536_p4 = scmp.ne.s32.totalorder %s694_s9, %s535_s23  ;;  %p541_p6 = scmp.lt.s32.totalorder %s535_s23, %s535_s23 }
 0x11f   :  { %p542_p7 = por %p541_p6, %p540_p5 }
 0x121   :  { %p543_p8 = pnand %p542_p7, %p536_p4 }
 0x123   :  { %546 = shalt.err (!%p543_p8)
}
 0x124   :  { %s547_s27 = scalar_lea.hbm %s766_s3, 128 }
 0x125   :  { %p548_p9 = scmp.ne.s32.totalorder %s766_s3, %s547_s27  ;;  %p551_p10 = scmp.lt.u32.totalorder %s547_s27, %s766_s3 }
 0x127   :  { %p553_p11 = pnand %p551_p10, %p548_p9 }
 0x129   :  { %556 = shalt.err (!%p553_p11)
}
 0x12a   :  { %391 = dma.vmem_to_hbm [thread:$0]  %s694_s9, 128, %s766_s3, [#allocation4]   ;;  %308 = vst.msk [vmem:[#allocation11] sm:$0xff] %vm78_vm0, %v307_v19  ;;  %381 = vst.msk [vmem:[#allocation12] sm:$0xff] %vm78_vm0, %v380_v20 }
 0x12b   :  { %s557_s2 = scalar_lea.vmem %s698_s11, 128  ;;  %p562_p13 = scmp.lt.s32.totalorder %s698_s11, %s698_s11 }
 0x12c   :  { %p558_p12 = scmp.ne.s32.totalorder %s698_s11, %s557_s2  ;;  %p563_p0 = scmp.lt.s32.totalorder %s557_s2, %s557_s2 }
 0x12e   :  { %p564_p1 = por %p563_p0, %p562_p13 }
 0x130   :  { %p565_p2 = pnand %p564_p1, %p558_p12 }
 0x132   :  { %568 = shalt.err (!%p565_p2)
}
 0x133   :  { %s569_s10 = scalar_lea.hbm %s768_s5, 128 }
 0x134   :  { %p570_p3 = scmp.ne.s32.totalorder %s768_s5, %s569_s10  ;;  %p573_p4 = scmp.lt.u32.totalorder %s569_s10, %s768_s5 }
 0x136   :  { %p575_p5 = pnand %p573_p4, %p570_p3 }
 0x138   :  { %578 = shalt.err (!%p575_p5)
}
 0x139   :  { %411 = dma.vmem_to_hbm [thread:$0]  %s698_s11, 128, %s768_s5, [#allocation10]  }
 0x13a   :  { %s579_s17 = scalar_lea.vmem %s419_s13, 128  ;;  %p584_p7 = scmp.lt.s32.totalorder %s419_s13, %s419_s13 }
 0x13b   :  { %p580_p6 = scmp.ne.s32.totalorder %s419_s13, %s579_s17  ;;  %p585_p8 = scmp.lt.s32.totalorder %s579_s17, %s579_s17 }
 0x13d   :  { %p586_p9 = por %p585_p8, %p584_p7 }
 0x13f   :  { %p587_p10 = pnand %p586_p9, %p580_p6 }
 0x141   :  { %590 = shalt.err (!%p587_p10)
}
 0x142   :  { %s591_s19 = scalar_lea.hbm %s769_s6, 128 }
 0x143   :  { %p592_p11 = scmp.ne.s32.totalorder %s769_s6, %s591_s19  ;;  %p595_p12 = scmp.lt.u32.totalorder %s591_s19, %s769_s6 }
 0x145   :  { %p597_p13 = pnand %p595_p12, %p592_p11 }
 0x147   :  { %600 = shalt.err (!%p597_p13)
}
 0x148   :  { %421 = dma.vmem_to_hbm [thread:$0]  %s419_s13, 128, %s769_s6, [#allocation13]  }
 0x149   :  { %605 = dma.done.wait [#allocation4], 128  }
 0x14a   :  { %606 = vsyncadd [#allocation4], 4294967168 }
 0x14b   :  { %607 = dma.done.wait [#allocation10], 256  }
 0x14c   :  { %608 = vsyncadd [#allocation10], 4294967040 }
 0x14d   :  { %609 = dma.done.wait [#allocation13], 128  }
 0x14e   :  { %610 = vsyncadd [#allocation13], 4294967168 }
 0x14f   :  { %434 = vsyncpa [#allocation3], 1 }
 0x150   :  { %435 = vsyncpa [#allocation6], 1 }
 0x151   :  { %436 = vsyncpa [#allocation4], 1 }
 0x152   :  { %437 = vsyncpa [#allocation10], 1 }
 0x153   :  { %438 = vsyncpa [#allocation13], 1 }

</bundles_post_ra>
